<compile_context>
chip_gen: v7x
topology: tpu7x:2x2x1
jax: 0.10.0
libtpu: 0.0.40
codegen_flags: <defaults>
</compile_context>

<pallas_src>
import functools
import math

import jax
import jax.numpy as jnp
from jax import lax
from jax.experimental import pallas as pl
from jax.experimental.pallas import tpu as pltpu

# Conservative scoped-VMEM ceiling that leaves headroom on v5e (16 MiB default)
# v6e (32 MiB) and v7x (64 MiB physical).
VMEM_LIMIT_BYTES = 32 * 1024 * 1024


def _pick_tile(dim, target, align):
    """Largest tile <= target that is align-multiple and divides dim; else full dim."""
    if dim <= target:
        return dim
    t = (min(target, dim) // align) * align
    while t >= align:
        if dim % t == 0:
            return t
        t -= align
    return dim


# ----------------------------------------------------------------------------
# Kernel 1: tiled linear  y = act(x @ W + b)
# ----------------------------------------------------------------------------
def _linear_kernel(x_ref, w_ref, b_ref, o_ref, acc_ref, *, activation):
    k = pl.program_id(2)

    @pl.when(k == 0)
    def _():
        acc_ref[...] = jnp.zeros_like(acc_ref)

    acc_ref[...] += jnp.dot(x_ref[...], w_ref[...],
                            preferred_element_type=jnp.float32)

    @pl.when(k == pl.num_programs(2) - 1)
    def _():
        out = acc_ref[...] + b_ref[...]
        if activation == "relu":
            out = jnp.maximum(out, 0.0)
        o_ref[...] = out.astype(o_ref.dtype)


def linear(x, w, b, *, activation=None, out_dtype=None,
           tm=256, tn=256, tk=512):
    """x: (M, K), w: (K, N), b: (N,) -> (M, N). Accumulates in f32."""
    M, K = x.shape
    N = w.shape[1]
    out_dtype = out_dtype or x.dtype
    w = w.astype(x.dtype)                       # bf16 operands feed the MXU
    b = b.reshape(1, N).astype(jnp.float32)     # bias added to f32 accumulator

    tm = _pick_tile(M, tm, 8)
    tn = _pick_tile(N, tn, 128)
    tk = _pick_tile(K, tk, 128)
    grid = (M // tm, N // tn, K // tk)

    kern = functools.partial(_linear_kernel, activation=activation)
    cost = pl.CostEstimate(
        flops=2 * M * K * N,
        transcendentals=0,
        bytes_accessed=(M * K + K * N + M * N + N) * x.dtype.itemsize,
    )
    return pl.pallas_call(
        kern,
        out_shape=jax.ShapeDtypeStruct((M, N), out_dtype),
        grid_spec=pltpu.PrefetchScalarGridSpec(
            num_scalar_prefetch=0,
            grid=grid,
            in_specs=[
                pl.BlockSpec((tm, tk), lambda i, j, k: (i, k)),
                pl.BlockSpec((tk, tn), lambda i, j, k: (k, j)),
                pl.BlockSpec((1, tn), lambda i, j, k: (0, j)),
            ],
            out_specs=pl.BlockSpec((tm, tn), lambda i, j, k: (i, j)),
            scratch_shapes=[pltpu.VMEM((tm, tn), jnp.float32)],
        ),
        compiler_params=pltpu.CompilerParams(
            dimension_semantics=("parallel", "parallel", "arbitrary"),
            vmem_limit_bytes=VMEM_LIMIT_BYTES,
        ),
        cost_estimate=cost,
    )(x, w, b)


# ----------------------------------------------------------------------------
# Kernel 2: fused residual-add + LayerNorm
# ----------------------------------------------------------------------------
def _add_ln_kernel(x_ref, y_ref, g_ref, b_ref, o_ref, *, eps):
    s = x_ref[...].astype(jnp.float32) + y_ref[...].astype(jnp.float32)
    mu = jnp.mean(s, axis=-1, keepdims=True)
    d = s - mu
    var = jnp.mean(d * d, axis=-1, keepdims=True)
    inv = lax.rsqrt(var + eps)
    o_ref[...] = (d * inv * g_ref[...] + b_ref[...]).astype(o_ref.dtype)


def add_layernorm(x, y, gamma, beta, *, eps=1e-5, out_dtype=None, tm=256):
    M, H = x.shape
    out_dtype = out_dtype or x.dtype
    tm = _pick_tile(M, tm, 8)
    kern = functools.partial(_add_ln_kernel, eps=eps)
    return pl.pallas_call(
        kern,
        out_shape=jax.ShapeDtypeStruct((M, H), out_dtype),
        grid_spec=pltpu.PrefetchScalarGridSpec(
            num_scalar_prefetch=0,
            grid=(M // tm,),
            in_specs=[
                pl.BlockSpec((tm, H), lambda i: (i, 0)),
                pl.BlockSpec((tm, H), lambda i: (i, 0)),
                pl.BlockSpec((1, H), lambda i: (0, 0)),
                pl.BlockSpec((1, H), lambda i: (0, 0)),
            ],
            out_specs=pl.BlockSpec((tm, H), lambda i: (i, 0)),
        ),
        compiler_params=pltpu.CompilerParams(
            dimension_semantics=("parallel",),
            vmem_limit_bytes=VMEM_LIMIT_BYTES,
        ),
    )(x, y, gamma.reshape(1, H).astype(jnp.float32),
      beta.reshape(1, H).astype(jnp.float32))


# ----------------------------------------------------------------------------
# Kernel 3: multi-head attention core (all heads per grid step, lane-dense out)
# ----------------------------------------------------------------------------
def _attention_kernel(qkv_ref, mask_ref, o_ref, *, n_heads, hid, inv_scale):
    head_dim = hid // n_heads
    qkv = qkv_ref[...]                 # (S, 3*hid), f32 or bf16
    q = qkv[:, :hid]
    k = qkv[:, hid:2 * hid]
    v = qkv[:, 2 * hid:]
    mask = mask_ref[...]               # (1, Sk) float; 0 means "mask out"
    neg = jnp.float32(-1e10)

    ctx_heads = []
    for h in range(n_heads):           # static unrolled loop over heads
        lo, hi = h * head_dim, (h + 1) * head_dim
        qh, kh, vh = q[:, lo:hi], k[:, lo:hi], v[:, lo:hi]
        # Q @ K^T without forming an explicit transpose; scale as a multiply.
        energy = lax.dot_general(
            qh, kh, (((1,), (1,)), ((), ())),
            preferred_element_type=jnp.float32) * inv_scale      # (Sq, Sk) f32
        energy = jnp.where(mask == 0.0, neg, energy)
        m = jnp.max(energy, axis=-1, keepdims=True)
        p = jnp.exp(energy - m)
        denom = jnp.sum(p, axis=-1, keepdims=True)
        attn = p * pl.reciprocal(denom, approx=True)             # EUP slot
        # TODO(synk): nn.Dropout on attention is identity in eval mode;
        # training-mode dropout not implemented.
        ctx_heads.append(
            jnp.dot(attn.astype(vh.dtype), vh,
                    preferred_element_type=jnp.float32))
    # Lane-dense writeback: all heads concatenated to the full hid width.
    o_ref[...] = jnp.concatenate(ctx_heads, axis=-1).astype(o_ref.dtype)


def attention(qkv, mask, *, n_heads, out_dtype=None):
    """qkv: (B, S, 3*hid) fused projections, mask: (B, 1, S) float.

    Returns context in (B, S, hid) layout (no per-head transposes needed).
    The (B, H, S, S) attention matrix is never written to HBM.
    TODO(synk): for long S, switch to an online-softmax (flash) formulation
    with a tiled Sk grid axis; full-S blocks are fine at these shapes.
    """
    B, S, threehid = qkv.shape
    hid = threehid // 3
    head_dim = hid // n_heads
    out_dtype = out_dtype or qkv.dtype
    inv_scale = 1.0 / math.sqrt(head_dim)

    kern = functools.partial(_attention_kernel, n_heads=n_heads, hid=hid,
                             inv_scale=inv_scale)
    cost = pl.CostEstimate(
        flops=4 * B * n_heads * S * S * head_dim,
        transcendentals=B * n_heads * S * S,
        bytes_accessed=(B * S * threehid + B * S * hid) * qkv.dtype.itemsize
        + B * S * 4,
    )
    return pl.pallas_call(
        kern,
        out_shape=jax.ShapeDtypeStruct((B, S, hid), out_dtype),
        grid_spec=pltpu.PrefetchScalarGridSpec(
            num_scalar_prefetch=0,
            grid=(B,),
            in_specs=[
                pl.BlockSpec((None, S, threehid), lambda b: (b, 0, 0)),
                pl.BlockSpec((None, 1, S), lambda b: (b, 0, 0)),
            ],
            out_specs=pl.BlockSpec((None, S, hid), lambda b: (b, 0, 0)),
        ),
        compiler_params=pltpu.CompilerParams(
            dimension_semantics=("parallel",),
            vmem_limit_bytes=VMEM_LIMIT_BYTES,
        ),
        cost_estimate=cost,
    )(qkv, mask)


# ----------------------------------------------------------------------------
# Module wrappers (glue in plain JAX: reshapes, parameter handling)
# ----------------------------------------------------------------------------
def transformer_block_fwd(x, mask, p, n_heads, compute_dtype):
    B, S, hid = x.shape
    x2 = x.reshape(B * S, hid)
    # Fused Q|K|V projection: one tiled matmul instead of three.
    qkv = linear(x2, p["w_qkv"], p["b_qkv"], out_dtype=compute_dtype)
    ctx = attention(qkv.reshape(B, S, 3 * hid), mask, n_heads=n_heads,
                    out_dtype=compute_dtype)
    a = linear(ctx.reshape(B * S, hid), p["w_o"], p["b_o"],
               out_dtype=compute_dtype)
    x1 = add_layernorm(x2, a, p["ln1_g"], p["ln1_b"], out_dtype=compute_dtype)
    h = linear(x1, p["w_ff1"], p["b_ff1"], activation="relu",
               out_dtype=compute_dtype)
    h = linear(h, p["w_ff2"], p["b_ff2"], out_dtype=compute_dtype)
    x1 = add_layernorm(x1, h, p["ln2_g"], p["ln2_b"], out_dtype=compute_dtype)
    return x1.reshape(B, S, hid)


def transformer_forward(src, src_mask, params, *, n_heads,
                        compute_dtype=jnp.float32):
    """Equivalent of Transformer.forward (eval mode: all dropouts are identity)."""
    B, S = src.shape
    hid = params["tok_emb"].shape[1]
    # Embedding lookups are plain XLA gathers (wrapper glue, not Pallas).
    # TODO(synk): training-mode dropout after the embedding is not implemented.
    x = jnp.take(params["tok_emb"], src, axis=0) * jnp.sqrt(jnp.float32(hid))
    x = x + jnp.take(params["pos_emb"], jnp.arange(S), axis=0)[None]
    x = x.astype(compute_dtype)
    mask = src_mask.astype(jnp.float32).reshape(B, 1, S)   # (B,1,1,S) -> (B,1,S)
    for p in params["layers"]:
        x = transformer_block_fwd(x, mask, p, n_heads, compute_dtype)
    out = linear(x.reshape(B * S, hid), params["w_out"], params["b_out"],
                 out_dtype=jnp.float32)
    return out.reshape(B, S, -1)


# ----------------------------------------------------------------------------
# Pure-JAX reference (f32) for correctness checking
# ----------------------------------------------------------------------------
def _ln_ref(x, g, b, eps=1e-5):
    mu = jnp.mean(x, axis=-1, keepdims=True)
    var = jnp.mean((x - mu) ** 2, axis=-1, keepdims=True)
    return (x - mu) / jnp.sqrt(var + eps) * g + b


def reference_transformer(src, src_mask, params, n_heads):
    B, S = src.shape
    hid = params["tok_emb"].shape[1]
    Dh = hid // n_heads
    x = params["tok_emb"][src] * jnp.sqrt(jnp.float32(hid)) \
        + params["pos_emb"][jnp.arange(S)][None]
    m = src_mask.reshape(B, 1, 1, S)
    for p in params["layers"]:
        x2 = x.reshape(B * S, hid)
        qkv = x2 @ p["w_qkv"] + p["b_qkv"]
        q, k, v = jnp.split(qkv, 3, axis=-1)

        def heads(t):
            return t.reshape(B, S, n_heads, Dh).transpose(0, 2, 1, 3)

        q, k, v = heads(q), heads(k), heads(v)
        energy = jnp.einsum("bhqd,bhkd->bhqk", q, k) / jnp.sqrt(jnp.float32(Dh))
        energy = jnp.where(m == 0, -1e10, energy)
        attn = jax.nn.softmax(energy, axis=-1)
        ctx = jnp.einsum("bhqk,bhkd->bhqd", attn, v)
        ctx = ctx.transpose(0, 2, 1, 3).reshape(B * S, hid)
        a = ctx @ p["w_o"] + p["b_o"]
        x1 = _ln_ref(x2 + a, p["ln1_g"], p["ln1_b"])
        h = jnp.maximum(x1 @ p["w_ff1"] + p["b_ff1"], 0.0)
        h = h @ p["w_ff2"] + p["b_ff2"]
        x = _ln_ref(x1 + h, p["ln2_g"], p["ln2_b"]).reshape(B, S, hid)
    out = x.reshape(B * S, hid) @ params["w_out"] + params["b_out"]
    return out.reshape(B, S, -1)


# ----------------------------------------------------------------------------
# Parameter init
# ----------------------------------------------------------------------------
def init_params(key, *, vocab, max_len, hid, pf_dim, n_layers, out_dim):
    keys = jax.random.split(key, 4 + n_layers)

    def w(k, shape, scale=0.05):
        return jax.random.normal(k, shape, jnp.float32) * scale

    params = {
        "tok_emb": w(keys[0], (vocab, hid), 0.1),
        "pos_emb": w(keys[1], (max_len, hid), 0.1),
        "w_out": w(keys[2], (hid, out_dim)),
        "b_out": w(keys[3], (out_dim,)),
        "layers": [],
    }
    for i in range(n_layers):
        ks = jax.random.split(keys[4 + i], 8)
        params["layers"].append({
            "w_qkv": w(ks[0], (hid, 3 * hid)),   # fused fc_q | fc_k | fc_v
            "b_qkv": w(ks[1], (3 * hid,)),
            "w_o": w(ks[2], (hid, hid)),
            "b_o": w(ks[3], (hid,)),
            "ln1_g": jnp.ones((hid,), jnp.float32),
            "ln1_b": jnp.zeros((hid,), jnp.float32),
            "w_ff1": w(ks[4], (hid, pf_dim)),
            "b_ff1": w(ks[5], (pf_dim,)),
            "w_ff2": w(ks[6], (pf_dim, hid)),
            "b_ff2": w(ks[7], (hid,)),
            "ln2_g": jnp.ones((hid,), jnp.float32),
            "ln2_b": jnp.zeros((hid,), jnp.float32),
        })
    return params


if __name__ == "__main__":
    # Small shapes consistent with the module (hid divisible by n_heads).
    B, S = 2, 8
    HID, N_HEADS, PF_DIM, N_LAYERS = 32, 4, 64, 2
    VOCAB, OUT_DIM, MAX_LEN = 64, 10, 16

    root = jax.random.PRNGKey(0)
    k_params, k_src, k_mask = jax.random.split(root, 3)
    params = init_params(k_params, vocab=VOCAB, max_len=MAX_LEN, hid=HID,
                         pf_dim=PF_DIM, n_layers=N_LAYERS, out_dim=OUT_DIM)

    src = jax.random.randint(k_src, (B, S), 0, VOCAB)
    # Binary float mask, matching `energy.masked_fill(mask == 0, -1e10)`.
    src_mask = (jax.random.uniform(k_mask, (B, 1, 1, S)) > 0.25).astype(jnp.float32)

    ref = reference_transformer(src, src_mask, params, N_HEADS)

    # f32 path
    out_f32 = jax.block_until_ready(
        transformer_forward(src, src_mask, params, n_heads=N_HEADS,
                            compute_dtype=jnp.float32))
    assert out_f32.shape == (B, S, OUT_DIM)
    err_f32 = float(jnp.max(jnp.abs(out_f32 - ref)))
    assert err_f32 < 2e-2, f"f32 path mismatch: max abs err {err_f32}"

    # bf16 operands for the MXU (f32 accumulation / f32 softmax & LayerNorm).
    out_bf16 = jax.block_until_ready(
        transformer_forward(src, src_mask, params, n_heads=N_HEADS,
                            compute_dtype=jnp.bfloat16))
    err_bf16 = float(jnp.max(jnp.abs(out_bf16 - ref)))
    assert err_bf16 < 2e-1, f"bf16 path mismatch: max abs err {err_bf16}"

    print("KERNEL_OK")
</pallas_src>

<mosaic_0001>
module attributes {stable_mosaic.version = 11 : i64} {
  func.func @_linear_kernel(%arg0: i32, %arg1: i32, %arg2: i32, %arg3: memref<16x32xf32, #tpu.memory_space<vmem>>, %arg4: memref<32x96xf32, #tpu.memory_space<vmem>>, %arg5: memref<1x96xf32, #tpu.memory_space<vmem>>, %arg6: memref<16x96xf32, #tpu.memory_space<vmem>>, %arg7: memref<16x96xf32, #tpu.memory_space<vmem>>) attributes {dimension_semantics = [#tpu.dimension_semantics<parallel>, #tpu.dimension_semantics<parallel>, #tpu.dimension_semantics<arbitrary>], iteration_bounds = array<i64: 1, 1, 1>, scalar_prefetch = 0 : i64, scratch_operands = 1 : i64, tpu.core_type = #tpu.core_type<tc>, window_params = [{transform_indices = @transform_0, window_bounds = array<i64: 16, 32>}, {transform_indices = @transform_1, window_bounds = array<i64: 32, 96>}, {transform_indices = @transform_2, window_bounds = array<i64: 1, 96>}, {transform_indices = @transform_3, window_bounds = array<i64: 16, 96>}]} {
    %c0_i32 = arith.constant 0 : i32
    %0 = arith.cmpi eq, %arg2, %c0_i32 : i32
    %1 = arith.extui %0 : i1 to i32
    %c0_i32_0 = arith.constant 0 : i32
    %2 = arith.cmpi ne, %1, %c0_i32_0 : i32
    scf.if %2 {
      %cst_10 = arith.constant 0.000000e+00 : f32
      %12 = vector.broadcast %cst_10 : f32 to vector<16x96xf32>
      %c0_11 = arith.constant 0 : index
      %c0_12 = arith.constant 0 : index
      %13 = vector.load %arg7[%c0_11, %c0_12] : memref<16x96xf32, #tpu.memory_space<vmem>>, vector<16x96xf32>
      tpu.vector_store %arg7[%c0_11, %c0_12], %12 {strides = array<i32>} : memref<16x96xf32, #tpu.memory_space<vmem>>, vector<16x96xf32>,
    } else {
    }
    %c0 = arith.constant 0 : index
    %c0_1 = arith.constant 0 : index
    %3 = vector.load %arg7[%c0, %c0_1] : memref<16x96xf32, #tpu.memory_space<vmem>>, vector<16x96xf32>
    %c0_2 = arith.constant 0 : index
    %c0_3 = arith.constant 0 : index
    %4 = vector.load %arg3[%c0_2, %c0_3] : memref<16x32xf32, #tpu.memory_space<vmem>>, vector<16x32xf32>
    %c0_4 = arith.constant 0 : index
    %c0_5 = arith.constant 0 : index
    %5 = vector.load %arg4[%c0_4, %c0_5] : memref<32x96xf32, #tpu.memory_space<vmem>>, vector<32x96xf32>
    %cst = arith.constant dense<0.000000e+00> : vector<16x96xf32>
    %6 = tpu.matmul %4, %5, %cst {dimension_numbers = #tpu.dot_dimension_numbers<[1], [0], [0], [1], [0, 0, 1, 1], [], []>} : vector<16x32xf32>, vector<32x96xf32>, vector<16x96xf32> -> vector<16x96xf32>
    %7 = arith.addf %3, %6 : vector<16x96xf32>
    %c0_6 = arith.constant 0 : index
    %c0_7 = arith.constant 0 : index
    %8 = vector.load %arg7[%c0_6, %c0_7] : memref<16x96xf32, #tpu.memory_space<vmem>>, vector<16x96xf32>
    tpu.vector_store %arg7[%c0_6, %c0_7], %7 {strides = array<i32>} : memref<16x96xf32, #tpu.memory_space<vmem>>, vector<16x96xf32>,
    %c0_i32_8 = arith.constant 0 : i32
    %9 = arith.cmpi eq, %arg2, %c0_i32_8 : i32
    %10 = arith.extui %9 : i1 to i32
    %c0_i32_9 = arith.constant 0 : i32
    %11 = arith.cmpi ne, %10, %c0_i32_9 : i32
    scf.if %11 {
      %c0_10 = arith.constant 0 : index
      %c0_11 = arith.constant 0 : index
      %12 = vector.load %arg7[%c0_10, %c0_11] : memref<16x96xf32, #tpu.memory_space<vmem>>, vector<16x96xf32>
      %c0_12 = arith.constant 0 : index
      %c0_13 = arith.constant 0 : index
      %13 = vector.load %arg5[%c0_12, %c0_13] : memref<1x96xf32, #tpu.memory_space<vmem>>, vector<1x96xf32>
      %14 = vector.broadcast %13 : vector<1x96xf32> to vector<16x96xf32>
      %15 = arith.addf %12, %14 : vector<16x96xf32>
      %c0_14 = arith.constant 0 : index
      %c0_15 = arith.constant 0 : index
      %16 = vector.load %arg6[%c0_14, %c0_15] : memref<16x96xf32, #tpu.memory_space<vmem>>, vector<16x96xf32>
      tpu.vector_store %arg6[%c0_14, %c0_15], %15 {strides = array<i32>} : memref<16x96xf32, #tpu.memory_space<vmem>>, vector<16x96xf32>,
    } else {
    }
    return
  }
  func.func @transform_0(%arg0: i32, %arg1: i32, %arg2: i32) -> (i32, i32) {
    %c0_i32 = arith.constant 0 : i32
    return %arg0, %arg2 : i32, i32
  }
  func.func @transform_1(%arg0: i32, %arg1: i32, %arg2: i32) -> (i32, i32) {
    %c0_i32 = arith.constant 0 : i32
    return %arg2, %arg1 : i32, i32
  }
  func.func @transform_2(%arg0: i32, %arg1: i32, %arg2: i32) -> (i32, i32) {
    %c0_i32 = arith.constant 0 : i32
    %c0_i32_0 = arith.constant 0 : i32
    return %c0_i32, %arg1 : i32, i32
  }
  func.func @transform_3(%arg0: i32, %arg1: i32, %arg2: i32) -> (i32, i32) {
    %c0_i32 = arith.constant 0 : i32
    return %arg0, %arg1 : i32, i32
  }
}

</mosaic_0001>

<bundles_post_ra>
// kernel: tpu_custom_call.1
= control target key start
LH: loop header
LB: loop body
LE: loop exit
PB: predicated region body
PF: predicated region fallthrough
CT: control target
= control target key end

     0   :  { %8 = vsyncpa [#allocation4], 0  ;;  %s365_s0 = inlined_call_operand.hbm [shape: f32[16,32], index: 0, kind: input, shape index: {}]   ;;  %s366_s1 = inlined_call_operand.hbm [shape: f32[32,96], index: 1, kind: input, shape index: {}]   ;;  %s367_s2 = inlined_call_operand.vmem [shape: f32[1,96], index: 2, kind: input, shape index: {}]   ;;  %s368_s3 = inlined_call_operand.hbm [shape: f32[16,96], index: 3, kind: output, shape index: {}]  }
   0x1   :  { %9 = vsyncpa [#allocation7], 0 }
   0x2   :  { %10 = vsyncpa [#allocation5], 0  ;;  %s285_s12 = smov [#allocation3]   ;;  %s213_s16 = scalar_lea.hbm %s365_s0, 256 }
   0x3   :  { %s16_s13 = sshll.u32 %s285_s12, 4  ;;  %p214_p0 = scmp.ne.s32.totalorder %s365_s0, %s213_s16  ;;  %s17_s13 = int_to_ptr.vmem [resolvable:$true] %s16_s13 }
   0x4   :  { %p217_p1 = scmp.lt.u32.totalorder %s213_s16, %s365_s0 }
   0x6   :  { %p219_p2 = pnand %p217_p1, %p214_p0 }
   0x8   :  { %222 = shalt.err (!%p219_p2)
}
   0x9   :  { %s223_s21 = scalar_lea.vmem %s17_s13, 256  ;;  %p228_p4 = scmp.lt.s32.totalorder %s17_s13, %s17_s13 }
   0xa   :  { %p224_p3 = scmp.ne.s32.totalorder %s17_s13, %s223_s21  ;;  %p229_p5 = scmp.lt.s32.totalorder %s223_s21, %s223_s21 }
   0xc   :  { %p230_p6 = por %p229_p5, %p228_p4 }
   0xe   :  { %p231_p7 = pnand %p230_p6, %p224_p3 }
  0x10   :  { %234 = shalt.err (!%p231_p7)
}
  0x11   :  { %s286_s22 = smov 128   ;;  %s287_s23 = smov 8  }
  0x12   :  { %22 = dma.hbm_to_vmem [thread:$0]  %s365_s0, 256, %s17_s13, [#allocation4], %s286_s22, %s286_s22, %s287_s23  }
  0x13   :  { %s288_s26 = smov [#allocation6]   ;;  %s235_s30 = scalar_lea.hbm %s366_s1, 512 }
  0x14   :  { %s28_s27 = sshll.u32 %s288_s26, 4  ;;  %p236_p8 = scmp.ne.s32.totalorder %s366_s1, %s235_s30  ;;  %s29_s27 = int_to_ptr.vmem [resolvable:$true] %s28_s27 }
  0x15   :  { %p239_p9 = scmp.lt.u32.totalorder %s235_s30, %s366_s1 }
  0x17   :  { %p241_p10 = pnand %p239_p9, %p236_p8 }
  0x19   :  { %244 = shalt.err (!%p241_p10)
}
  0x1a   :  { %s245_s8 = scalar_lea.vmem %s29_s27, 512  ;;  %p250_p12 = scmp.lt.s32.totalorder %s29_s27, %s29_s27 }
  0x1b   :  { %p246_p11 = scmp.ne.s32.totalorder %s29_s27, %s245_s8  ;;  %p251_p13 = scmp.lt.s32.totalorder %s245_s8, %s245_s8 }
  0x1d   :  { %p252_p0 = por %p251_p13, %p250_p12 }
  0x1f   :  { %p253_p1 = pnand %p252_p0, %p246_p11 }
  0x21   :  { %256 = shalt.err (!%p253_p1)
}
  0x22   :  { %34 = dma.hbm_to_vmem [thread:$0]  %s366_s1, 512, %s29_s27, [#allocation7], %s286_s22, %s286_s22, %s287_s23  }
  0x23   :  { %279 = dma.done.wait [#allocation4], 256  }
  0x24   :  { %280 = vsyncadd [#allocation4], 4294967040 }
  0x25   :  { %281 = dma.done.wait [#allocation7], 512  }
  0x26   :  { %282 = vsyncadd [#allocation7], 4294966784  ;;  %vm47_vm0 = vcmask 785408   ;;  %v289_v0 = vmov 0.0   ;;  %vm58_vm1 = vcmask 261120   ;;  %v54_v1 = vld [vmem:[#allocation6] sm:$0xff] }
  0x27   :  { %49 = vst.msk [vmem:[#allocation2 + $0x8] sm:$0xff] %vm47_vm0, %v289_v0  ;;  %48 = vst.msk [vmem:[#allocation2] sm:$0xff] %vm47_vm0, %v289_v0  ;;  %v55_v2 = vld [vmem:[#allocation6 + $0x8] sm:$0xff]  ;;  %v56_v3 = vld [vmem:[#allocation6 + $0x10] sm:$0xff]  ;;  %s290_s11 = smov [#allocation8]  }
  0x28   :  { %v199_v4 = vpack.c.bf16 %v55_v2, %v54_v1  ;;  %v57_v5 = vld [vmem:[#allocation6 + $0x18] sm:$0xff]  ;;  %v52_v6 = vld [vmem:[#allocation3] sm:$0xff]  ;;  %v181_v15 = vld [vmem:[%s367_s2] ss:$0 sm:$0xff]  ;;  %s166_s12 = sshll.u32 %s290_s11, 4  ;;  %s167_s12 = int_to_ptr.vmem [resolvable:$true] %s166_s12 }
  0x29   :  { %v203_v7 = vpack.c.bf16 %v57_v5, %v56_v3  ;;  %196 = vmatprep.mubr.msk.f32.mxu0 %vm58_vm1, %v52_v6  ;;  %v53_v8 = vld [vmem:[#allocation3 + $0x8] sm:$0xff]  ;;  %s257_s13 = scalar_lea.vmem %s167_s12, 256  ;;  %p262_p3 = scmp.lt.s32.totalorder %s167_s12, %s167_s12 }
  0x2a   :  { %200 = vmatprep.subr.bf16.mxu0 %v199_v4  ;;  %p258_p2 = scmp.ne.s32.totalorder %s167_s12, %s257_s13  ;;  %p263_p4 = scmp.lt.s32.totalorder %s257_s13, %s257_s13 }
  0x2b   :  { %202 = vmatpush3.bf16.msra.mxu0 %v199_v4 }
  0x2c   :  { %204 = vmatprep.subr.bf16.mxu0 %v203_v7  ;;  %p264_p5 = por %p263_p4, %p262_p3 }
  0x2e   :  { %v51_v9 = vld [vmem:[#allocation2 + $0x8] sm:$0xff]  ;;  %v50_v10 = vld [vmem:[#allocation2] sm:$0xff]  ;;  %p265_p6 = pnand %p264_p5, %p258_p2 }
  0x2f   :  { %206 = vmatpush3.bf16.msra.mxu0 %v203_v7 }
  0x32   :  { %197 = vmatmul.mubr.msk.f32.vlgmr.msra.gmra.mrb[0].mxu0 %vm58_vm1, %v53_v8 }
 0x105   :  { %v198_v11 = vpop.f32.mrb[0].mxu0 }
 0x106   :  { %v141_v12 = vadd.f32 %v198_v11, %v51_v9  ;;  %v131_v13 = vpop.f32.mrb[1].mxu0 }
 0x107   :  { %v140_v14 = vadd.f32 %v131_v13, %v50_v10 }
 0x108   :  { %144 = vst.msk [vmem:[#allocation2 + $0x8] sm:$0xff] %vm47_vm0, %v141_v12 }
 0x109   :  { %143 = vst.msk [vmem:[#allocation2] sm:$0xff] %vm47_vm0, %v140_v14 }
 0x10f   :  { %v149_v16 = vld [vmem:[#allocation2 + $0x8] sm:$0xff] }
 0x110   :  { %v148_v17 = vld [vmem:[#allocation2] sm:$0xff]  ;;  %v158_v18 = vadd.f32 %v181_v15, %v149_v16 }
 0x111   :  { %v157_v19 = vadd.f32 %v181_v15, %v148_v17 }
 0x112   :  { %160 = vst.msk [vmem:[#allocation8 + $0x8] sm:$0xff] %vm47_vm0, %v158_v18 }
 0x113   :  { %159 = vst.msk [vmem:[#allocation8] sm:$0xff] %vm47_vm0, %v157_v19 }
 0x114   :  { %268 = shalt.err (!%p265_p6)
}
 0x115   :  { %s269_s15 = scalar_lea.hbm %s368_s3, 256 }
 0x116   :  { %p270_p7 = scmp.ne.s32.totalorder %s368_s3, %s269_s15  ;;  %p273_p8 = scmp.lt.u32.totalorder %s269_s15, %s368_s3 }
 0x118   :  { %p275_p9 = pnand %p273_p8, %p270_p7 }
 0x11a   :  { %278 = shalt.err (!%p275_p9)
}
 0x11b   :  { %172 = dma.vmem_to_hbm [thread:$0]  %s167_s12, 256, %s368_s3, [#allocation5], %s286_s22, %s286_s22, %s287_s23  }
 0x11c   :  { %283 = dma.done.wait [#allocation5], 256  }
 0x11d   :  { %284 = vsyncadd [#allocation5], 4294967040 }
 0x11e   :  { %176 = vsyncpa [#allocation4], 1 }
 0x11f   :  { %177 = vsyncpa [#allocation7], 1 }
 0x120   :  { %178 = vsyncpa [#allocation5], 1 }

</bundles_post_ra>
